<compile_context>
chip_gen: v7x
topology: tpu7x:2x2x1
jax: 0.10.0
libtpu: 0.0.40
codegen_flags: <defaults>
</compile_context>

<pallas_src>
import jax
import jax.numpy as jnp
from jax.experimental import pallas as pl
from jax.experimental.pallas import tpu as pltpu


LANES = 128  # lane-dense last dim (full vreg width)


def _scale_kernel(bias_ref, x_ref, o_ref):
    # bias_ref: (1,) f32 scalar in SMEM; x_ref/o_ref: (block_rows, LANES) VMEM.
    # Cast the scalar to the tile dtype so bf16/fp16 tiles stay dtype-matched
    # (no whole-tile f32 promotion + narrowing on store).
    o_ref[...] = x_ref[...] * bias_ref[0].astype(x_ref.dtype)


def _device_kind() -> str:
    try:
        return jax.devices()[0].device_kind.lower()
    except Exception:
        return ""


def _dimension_semantics():
    kind = _device_kind()
    # Only CORE_PARALLEL actually shards the grid across v7x's 2 TensorCores;
    # plain "parallel" is the safe default on single-TC parts (v5e/v6e).
    if "v7" in kind or "7x" in kind:
        return (pltpu.CORE_PARALLEL,)
    return ("parallel",)


def _default_block_bytes() -> int:
    kind = _device_kind()
    # v5e: 16 MiB default scoped VMEM and lowest HBM BW -> 1 MiB tiles are
    # plenty (4 MiB with double-buffered in+out). v6e/v7x: 2 MiB tiles
    # (8 MiB VMEM) fit the 32 MiB default scoped limit with headroom.
    if "v5 lite" in kind or "v5e" in kind or "v5litepod" in kind:
        return 1 << 20
    return 2 << 20


def _sublane_multiple(dtype) -> int:
    # f32 -> 8, bf16/fp16 -> 16, int8/fp8 -> 32 (packed min-tile rows).
    itemsize = jnp.dtype(dtype).itemsize
    return max(8, 32 // max(1, itemsize))


def learnable_coefficient(x, bias, *, block_bytes=None):
    """out = x * bias (bias is a (1,) learnable scalar), elementwise, any shape."""
    orig_shape = x.shape
    n = int(x.size)
    dtype = x.dtype
    itemsize = jnp.dtype(dtype).itemsize
    sub = _sublane_multiple(dtype)
    granule = sub * LANES  # smallest fully-packed (sub, 128) slab

    if block_bytes is None:
        block_bytes = _default_block_bytes()

    # Flatten to a lane-dense 2-D slab (rows, 128). Only pad when the element
    # count does not already fill whole packed (sub, 128) slabs -- the common
    # NCHW case needs no pad/slice (those are full-tensor HBM copies).
    x_flat = x.reshape(-1)
    padded_n = -(-n // granule) * granule
    needs_pad = padded_n != n
    if needs_pad:
        x_flat = jnp.pad(x_flat, (0, padded_n - n))
    rows = padded_n // LANES
    x2d = x_flat.reshape(rows, LANES)

    # Row-block size: target ~block_bytes per tile, multiple of the packed
    # sublane count, never bigger than the array itself.
    target_rows = max(sub, (block_bytes // (LANES * itemsize)) // sub * sub)
    rows_per_block = min(target_rows, rows)  # rows is a multiple of sub
    grid = (pl.cdiv(rows, rows_per_block),)

    data_spec = pl.BlockSpec((rows_per_block, LANES), lambda i: (i, 0))

    cost = pl.CostEstimate(
        flops=n,
        transcendentals=0,
        bytes_accessed=2 * n * itemsize + 4,
    )

    out2d = pl.pallas_call(
        _scale_kernel,
        grid=grid,
        in_specs=[
            pl.BlockSpec(memory_space=pltpu.MemorySpace.SMEM),  # scalar bias
            data_spec,                                          # x tile
        ],
        out_specs=data_spec,
        out_shape=jax.ShapeDtypeStruct((rows, LANES), dtype),
        compiler_params=pltpu.CompilerParams(
            dimension_semantics=_dimension_semantics()),
        cost_estimate=cost,
    )(jnp.asarray(bias, jnp.float32).reshape(1), x2d)

    out_flat = out2d.reshape(-1)
    if needs_pad:
        out_flat = out_flat[:n]
    return out_flat.reshape(orig_shape)


def init_params():
    # Matches nn.Parameter(torch.FloatTensor([1.0]))
    return dict(bias=jnp.full((1,), 1.0, jnp.float32))


if __name__ == "__main__":
    key = jax.random.PRNGKey(0)
    k1, k2, k3 = jax.random.split(key, 3)

    # Small NCHW-like input consistent with how the module is used in fusion.py.
    x = jax.random.normal(k1, (2, 4, 16, 16), jnp.float32)
    params = init_params()

    out = learnable_coefficient(x, params["bias"])
    jax.block_until_ready(out)
    assert out.shape == x.shape
    assert bool(jnp.allclose(out, x * params["bias"][0], atol=1e-6, rtol=1e-6))

    # Non-unit coefficient + a shape exercising a larger slab (1024 rows).
    x2 = jax.random.normal(k2, (2, 16, 64, 64), jnp.float32)
    bias2 = jnp.full((1,), 0.5, jnp.float32)
    out2 = learnable_coefficient(x2, bias2)
    jax.block_until_ready(out2)
    assert out2.shape == x2.shape
    assert bool(jnp.allclose(out2, x2 * 0.5, atol=1e-6, rtol=1e-6))

    # bf16 input: exercises dtype-matched scalar cast and 16-row sublane pack.
    x3 = jax.random.normal(k3, (2, 4, 16, 16), jnp.bfloat16)
    bias3 = jnp.full((1,), 2.0, jnp.float32)
    out3 = learnable_coefficient(x3, bias3)
    jax.block_until_ready(out3)
    assert out3.shape == x3.shape
    assert bool(jnp.allclose(out3.astype(jnp.float32),
                             x3.astype(jnp.float32) * 2.0,
                             atol=1e-2, rtol=1e-2))

    print("KERNEL_OK")
</pallas_src>

<mosaic_0001>
module attributes {stable_mosaic.version = 11 : i64} {
  func.func @_scale_kernel(%arg0: i32, %arg1: memref<1xf32, #tpu.memory_space<smem>>, %arg2: memref<16x128xf32, #tpu.memory_space<vmem>>, %arg3: memref<16x128xf32, #tpu.memory_space<vmem>>) attributes {dimension_semantics = [#tpu.dimension_semantics<parallel>], iteration_bounds = array<i64: 1>, scalar_prefetch = 0 : i64, scratch_operands = 0 : i64, tpu.core_type = #tpu.core_type<tc>, window_params = [{transform_indices = @transform_0, window_bounds = array<i64: 1>}, {transform_indices = @transform_1, window_bounds = array<i64: 16, 128>}, {transform_indices = @transform_2, window_bounds = array<i64: 16, 128>}]} {
    %c0 = arith.constant 0 : index
    %c0_0 = arith.constant 0 : index
    %0 = vector.load %arg2[%c0, %c0_0] : memref<16x128xf32, #tpu.memory_space<vmem>>, vector<16x128xf32>
    %c0_1 = arith.constant 0 : index
    %1 = memref.load %arg1[%c0_1] : memref<1xf32, #tpu.memory_space<smem>>
    %2 = vector.broadcast %1 : f32 to vector<16x128xf32>
    %3 = arith.mulf %0, %2 : vector<16x128xf32>
    %c0_2 = arith.constant 0 : index
    %c0_3 = arith.constant 0 : index
    %4 = vector.load %arg3[%c0_2, %c0_3] : memref<16x128xf32, #tpu.memory_space<vmem>>, vector<16x128xf32>
    tpu.vector_store %arg3[%c0_2, %c0_3], %3 {strides = array<i32>} : memref<16x128xf32, #tpu.memory_space<vmem>>, vector<16x128xf32>,
    return
  }
  func.func @transform_0(%arg0: i32) -> i32 {
    %c0_i32 = arith.constant 0 : i32
    %c0_i32_0 = arith.constant 0 : i32
    return %c0_i32 : i32
  }
  func.func @transform_1(%arg0: i32) -> (i32, i32) {
    %c0_i32 = arith.constant 0 : i32
    %c0_i32_0 = arith.constant 0 : i32
    return %arg0, %c0_i32 : i32, i32
  }
  func.func @transform_2(%arg0: i32) -> (i32, i32) {
    %c0_i32 = arith.constant 0 : i32
    %c0_i32_0 = arith.constant 0 : i32
    return %arg0, %c0_i32 : i32, i32
  }
}

</mosaic_0001>

<bundles_post_ra>
// kernel: tpu_custom_call.1
= control target key start
LH: loop header
LB: loop body
LE: loop exit
PB: predicated region body
PF: predicated region fallthrough
CT: control target
= control target key end

     0   :  { %8 = vsyncpa [#allocation4], 0  ;;  %s156_s0 = inlined_call_operand.<no memory space> [shape: f32[1], index: 0, kind: input, shape index: {}]   ;;  %s157_s1 = inlined_call_operand.hbm [shape: f32[16,128], index: 1, kind: input, shape index: {}]   ;;  %s158_s2 = inlined_call_operand.hbm [shape: f32[16,128], index: 2, kind: output, shape index: {}]  }
   0x1   :  { %9 = vsyncpa [#allocation5], 0  ;;  %s104_s9 = smov [#allocation3]   ;;  %s56_s13 = scalar_lea.hbm %s157_s1, 256 }
   0x2   :  { %s17_s10 = sshll.u32 %s104_s9, 4  ;;  %p57_p0 = scmp.ne.s32.totalorder %s157_s1, %s56_s13  ;;  %s18_s10 = int_to_ptr.vmem [resolvable:$true] %s17_s10 }
   0x3   :  { %p60_p1 = scmp.lt.u32.totalorder %s56_s13, %s157_s1 }
   0x5   :  { %p62_p2 = pnand %p60_p1, %p57_p0 }
   0x7   :  { %65 = shalt.err (!%p62_p2)
}
   0x8   :  { %s66_s18 = scalar_lea.vmem %s18_s10, 256  ;;  %p71_p4 = scmp.lt.s32.totalorder %s18_s10, %s18_s10 }
   0x9   :  { %p67_p3 = scmp.ne.s32.totalorder %s18_s10, %s66_s18  ;;  %p72_p5 = scmp.lt.s32.totalorder %s66_s18, %s66_s18 }
   0xb   :  { %p73_p6 = por %p72_p5, %p71_p4 }
   0xd   :  { %p74_p7 = pnand %p73_p6, %p67_p3 }
   0xf   :  { %77 = shalt.err (!%p74_p7)
}
  0x10   :  { %s105_s19 = smov 128   ;;  %s106_s20 = smov 8  }
  0x11   :  { %23 = dma.hbm_to_vmem [thread:$0]  %s157_s1, 256, %s18_s10, [#allocation4], %s105_s19, %s105_s19, %s106_s20  }
  0x12   :  { %100 = dma.done.wait [#allocation4], 256  }
  0x13   :  { %101 = vsyncadd [#allocation4], 4294967040  ;;  %v30_v0 = vstv %s156_s0  ;;  %s107_s25 = smov [#allocation6]   ;;  %v27_v1 = vld [vmem:[#allocation3] sm:$0xff]  ;;  %v28_v2 = vld [vmem:[#allocation3 + $0x8] sm:$0xff] }
  0x14   :  { %s40_s26 = sshll.u32 %s107_s25, 4  ;;  %v31_v3 = vmul.f32 %v30_v0, %v27_v1  ;;  %v32_v4 = vmul.f32 %v30_v0, %v28_v2  ;;  %s41_s26 = int_to_ptr.vmem [resolvable:$true] %s40_s26 }
  0x15   :  { %s78_s27 = scalar_lea.vmem %s41_s26, 256  ;;  %p83_p9 = scmp.lt.s32.totalorder %s41_s26, %s41_s26 }
  0x16   :  { %33 = vst [vmem:[#allocation6] sm:$0xff] %v31_v3  ;;  %34 = vst [vmem:[#allocation6 + $0x8] sm:$0xff] %v32_v4  ;;  %p79_p8 = scmp.ne.s32.totalorder %s41_s26, %s78_s27  ;;  %p84_p10 = scmp.lt.s32.totalorder %s78_s27, %s78_s27 }
  0x18   :  { %p85_p11 = por %p84_p10, %p83_p9 }
  0x1a   :  { %p86_p12 = pnand %p85_p11, %p79_p8 }
  0x1c   :  { %89 = shalt.err (!%p86_p12)
}
  0x1d   :  { %s90_s0 = scalar_lea.hbm %s158_s2, 256 }
  0x1e   :  { %p91_p13 = scmp.ne.s32.totalorder %s158_s2, %s90_s0  ;;  %p94_p0 = scmp.lt.u32.totalorder %s90_s0, %s158_s2 }
  0x20   :  { %p96_p1 = pnand %p94_p0, %p91_p13 }
  0x22   :  { %99 = shalt.err (!%p96_p1)
}
  0x23   :  { %46 = dma.vmem_to_hbm [thread:$0]  %s41_s26, 256, %s158_s2, [#allocation5], %s105_s19, %s105_s19, %s106_s20  }
  0x24   :  { %102 = dma.done.wait [#allocation5], 256  }
  0x25   :  { %103 = vsyncadd [#allocation5], 4294967040 }
  0x26   :  { %50 = vsyncpa [#allocation4], 1 }
  0x27   :  { %51 = vsyncpa [#allocation5], 1 }

</bundles_post_ra>
